<compile_context>
chip_gen: v5e
topology: v5e:2x2
jax: 0.10.0
libtpu: 0.0.40
codegen_flags: <defaults>
</compile_context>

<pallas_src>
import jax
import jax.numpy as jnp
from jax.experimental import pallas as pl
from jax.experimental.pallas import tpu as pltpu


def _elementwise_kernel_factory(mask_dtype):
    def kernel(x_ref, add_ref, sub_ref, mul_ref, div_ref, gt_ref, lt_ref, eq_ref):
        x = x_ref[...]
        add_ref[...] = x + 2.0
        sub_ref[...] = x - 2.0
        mul_ref[...] = x * 2.0
        div_ref[...] = x * 0.5          # x / 2; exact because divisor is a power of two
        # comparisons -> narrow masks straight from the kernel (write-traffic bound)
        gt_ref[...] = (x > 3.0).astype(mask_dtype)
        lt_ref[...] = (x < 3.0).astype(mask_dtype)
        eq_ref[...] = (x == 2.0).astype(mask_dtype)
    return kernel


def _block_cap_and_vmem_limit():
    """Pick block size (elements) and vmem_limit_bytes per TPU generation."""
    vmem_bytes = None
    try:
        info = pltpu.get_tpu_info()
        vmem_bytes = getattr(info, "vmem_capacity_bytes", None)
    except Exception:
        vmem_bytes = None
    if vmem_bytes is not None and vmem_bytes >= 100 * 1024 * 1024:
        # v5e / v6e: 128 MiB VMEM -> bigger blocks, fewer grid steps.
        return 1024 * 1024, 64 * 1024 * 1024
    # v7x (64 MiB VMEM per TC) or unknown: keep the footprint small (~11.5 MiB).
    return 256 * 1024, 32 * 1024 * 1024


def _pick_layout(total):
    """Widest lane dim (multiple of 128, up to 1024) that divides `total`."""
    for lane in (1024, 512, 256, 128):
        if total % lane == 0:
            return total // lane, lane
    raise AssertionError("total must be a multiple of 128 here")


# Tri-state cache: None = untested, True = bool outputs supported, False = use int8.
_BOOL_MASK_OUT = None


def _call(x2, tile_rows, lane, grid, mask_dtype, vmem_limit_bytes):
    rows = x2.shape[0]
    f32 = jax.ShapeDtypeStruct((rows, lane), x2.dtype)
    msk = jax.ShapeDtypeStruct((rows, lane), mask_dtype)
    spec = pl.BlockSpec((tile_rows, lane), lambda i: (i, 0))
    return pl.pallas_call(
        _elementwise_kernel_factory(mask_dtype),
        out_shape=(f32, f32, f32, f32, msk, msk, msk),
        grid=grid,
        in_specs=[spec],
        out_specs=(spec,) * 7,
        compiler_params=pltpu.CompilerParams(
            dimension_semantics=("parallel",),
            vmem_limit_bytes=vmem_limit_bytes),
    )(x2)


def pt_module_forward(x):
    """Reproduces PtModule.forward(x) -> dict of 7 arrays."""
    global _BOOL_MASK_OUT

    orig_shape = x.shape
    total = x.size

    flat = x.reshape(-1)
    # Only pad when the flattened length is not a multiple of 128; the common
    # NCHW case is a multiple, so no output-stripping copies are generated.
    if total % 128 != 0:
        padded_total = -(-total // 128) * 128
        flat = jnp.pad(flat, (0, padded_total - total))
        padded = True
    else:
        padded_total = total
        padded = False

    rows, lane = _pick_layout(padded_total)
    block_cap, vmem_limit = _block_cap_and_vmem_limit()

    if rows * lane <= block_cap:
        # Small/medium problem: one grid step, whole array as one block
        # (legal for any `rows`, even when rows % 8 != 0).
        tile_rows = rows
        grid = (1,)
    else:
        # Large problem: lane-dense tiles; ragged last block is handled by the
        # Pallas pipeline (OOB reads padded, OOB writes masked) -> no padding.
        tile_rows = max(32, (block_cap // lane) // 32 * 32)
        grid = (pl.cdiv(rows, tile_rows),)

    x2 = flat.reshape(rows, lane)

    outs = None
    if _BOOL_MASK_OUT is not False:
        try:
            outs = _call(x2, tile_rows, lane, grid, jnp.bool_, vmem_limit)
            jax.block_until_ready(outs)
            _BOOL_MASK_OUT = True
        except Exception:
            # Mosaic on this JAX version rejects i1 outputs -> int8 fallback.
            _BOOL_MASK_OUT = False
            outs = None
    if outs is None:
        outs = _call(x2, tile_rows, lane, grid, jnp.int8, vmem_limit)

    add, sub, mul, div, gt, lt, eq = outs

    def _unflatten(a):
        if padded:
            a = a.reshape(-1)[:total]
        return a.reshape(orig_shape)

    def _mask(a):
        a = _unflatten(a)
        return a if a.dtype == jnp.bool_ else a.astype(jnp.bool_)

    return {
        "addition":       _unflatten(add),
        "subtraction":    _unflatten(sub),
        "multiplication": _unflatten(mul),
        "division":       _unflatten(div),
        "greater_than":   _mask(gt),
        "less_than":      _mask(lt),
        "equal_to":       _mask(eq),
    }


if __name__ == "__main__":
    key = jax.random.PRNGKey(0)
    # NCHW input, small shape: batch=2, channels=4, spatial=16x16
    x = jax.random.normal(key, (2, 4, 16, 16), dtype=jnp.float32) * 3.0
    # make sure the == 2 branch is exercised for at least one element
    x = x.at[0, 0, 0, 0].set(2.0)

    results = pt_module_forward(x)
    jax.block_until_ready(results)

    # lightweight correctness check against plain JAX reference
    ref = {
        "addition": x + 2,
        "subtraction": x - 2,
        "multiplication": x * 2,
        "division": x / 2,
        "greater_than": x > 3,
        "less_than": x < 3,
        "equal_to": x == 2,
    }
    for k in ref:
        assert results[k].dtype == ref[k].dtype, k
        assert results[k].shape == ref[k].shape, k
        assert jnp.array_equal(results[k], ref[k]), k

    print("KERNEL_OK")
</pallas_src>

<mosaic_0001>
module attributes {stable_mosaic.version = 11 : i64} {
  func.func @kernel(%arg0: i32, %arg1: memref<2x1024xf32, #tpu.memory_space<vmem>>, %arg2: memref<2x1024xf32, #tpu.memory_space<vmem>>, %arg3: memref<2x1024xf32, #tpu.memory_space<vmem>>, %arg4: memref<2x1024xf32, #tpu.memory_space<vmem>>, %arg5: memref<2x1024xf32, #tpu.memory_space<vmem>>, %arg6: memref<2x1024xi32, #tpu.memory_space<vmem>>, %arg7: memref<2x1024xi32, #tpu.memory_space<vmem>>, %arg8: memref<2x1024xi32, #tpu.memory_space<vmem>>) attributes {dimension_semantics = [#tpu.dimension_semantics<parallel>], iteration_bounds = array<i64: 1>, scalar_prefetch = 0 : i64, scratch_operands = 0 : i64, tpu.core_type = #tpu.core_type<tc>, window_params = [{transform_indices = @transform_0, window_bounds = array<i64: 2, 1024>}, {transform_indices = @transform_1, window_bounds = array<i64: 2, 1024>}, {transform_indices = @transform_2, window_bounds = array<i64: 2, 1024>}, {transform_indices = @transform_3, window_bounds = array<i64: 2, 1024>}, {transform_indices = @transform_4, window_bounds = array<i64: 2, 1024>}, {transform_indices = @transform_5, window_bounds = array<i64: 2, 1024>}, {transform_indices = @transform_6, window_bounds = array<i64: 2, 1024>}, {transform_indices = @transform_7, window_bounds = array<i64: 2, 1024>}]} {
    %c0 = arith.constant 0 : index
    %c0_0 = arith.constant 0 : index
    %0 = vector.load %arg1[%c0, %c0_0] : memref<2x1024xf32, #tpu.memory_space<vmem>>, vector<2x1024xf32>
    %cst = arith.constant 2.000000e+00 : f32
    %1 = vector.broadcast %cst : f32 to vector<2x1024xf32>
    %2 = arith.addf %0, %1 : vector<2x1024xf32>
    %c0_1 = arith.constant 0 : index
    %c0_2 = arith.constant 0 : index
    %3 = vector.load %arg2[%c0_1, %c0_2] : memref<2x1024xf32, #tpu.memory_space<vmem>>, vector<2x1024xf32>
    tpu.vector_store %arg2[%c0_1, %c0_2], %2 {strides = array<i32>} : memref<2x1024xf32, #tpu.memory_space<vmem>>, vector<2x1024xf32>,
    %cst_3 = arith.constant 2.000000e+00 : f32
    %4 = vector.broadcast %cst_3 : f32 to vector<2x1024xf32>
    %5 = arith.subf %0, %4 : vector<2x1024xf32>
    %c0_4 = arith.constant 0 : index
    %c0_5 = arith.constant 0 : index
    %6 = vector.load %arg3[%c0_4, %c0_5] : memref<2x1024xf32, #tpu.memory_space<vmem>>, vector<2x1024xf32>
    tpu.vector_store %arg3[%c0_4, %c0_5], %5 {strides = array<i32>} : memref<2x1024xf32, #tpu.memory_space<vmem>>, vector<2x1024xf32>,
    %cst_6 = arith.constant 2.000000e+00 : f32
    %7 = vector.broadcast %cst_6 : f32 to vector<2x1024xf32>
    %8 = arith.mulf %0, %7 : vector<2x1024xf32>
    %c0_7 = arith.constant 0 : index
    %c0_8 = arith.constant 0 : index
    %9 = vector.load %arg4[%c0_7, %c0_8] : memref<2x1024xf32, #tpu.memory_space<vmem>>, vector<2x1024xf32>
    tpu.vector_store %arg4[%c0_7, %c0_8], %8 {strides = array<i32>} : memref<2x1024xf32, #tpu.memory_space<vmem>>, vector<2x1024xf32>,
    %cst_9 = arith.constant 5.000000e-01 : f32
    %10 = vector.broadcast %cst_9 : f32 to vector<2x1024xf32>
    %11 = arith.mulf %0, %10 : vector<2x1024xf32>
    %c0_10 = arith.constant 0 : index
    %c0_11 = arith.constant 0 : index
    %12 = vector.load %arg5[%c0_10, %c0_11] : memref<2x1024xf32, #tpu.memory_space<vmem>>, vector<2x1024xf32>
    tpu.vector_store %arg5[%c0_10, %c0_11], %11 {strides = array<i32>} : memref<2x1024xf32, #tpu.memory_space<vmem>>, vector<2x1024xf32>,
    %cst_12 = arith.constant 3.000000e+00 : f32
    %13 = vector.broadcast %cst_12 : f32 to vector<2x1024xf32>
    %14 = arith.cmpf ogt, %0, %13 : vector<2x1024xf32>
    %c0_13 = arith.constant 0 : index
    %c0_14 = arith.constant 0 : index
    %15 = vector.load %arg6[%c0_13, %c0_14] : memref<2x1024xi32, #tpu.memory_space<vmem>>, vector<2x1024xi32>
    %16 = arith.extui %14 : vector<2x1024xi1> to vector<2x1024xi32>
    %cst_15 = arith.constant dense<0> : vector<2x1024xi32>
    %17 = arith.cmpi ne, %15, %cst_15 : vector<2x1024xi32>
    tpu.vector_store %arg6[%c0_13, %c0_14], %16 {strides = array<i32>} : memref<2x1024xi32, #tpu.memory_space<vmem>>, vector<2x1024xi32>,
    %cst_16 = arith.constant 3.000000e+00 : f32
    %18 = vector.broadcast %cst_16 : f32 to vector<2x1024xf32>
    %19 = arith.cmpf olt, %0, %18 : vector<2x1024xf32>
    %c0_17 = arith.constant 0 : index
    %c0_18 = arith.constant 0 : index
    %20 = vector.load %arg7[%c0_17, %c0_18] : memref<2x1024xi32, #tpu.memory_space<vmem>>, vector<2x1024xi32>
    %21 = arith.extui %19 : vector<2x1024xi1> to vector<2x1024xi32>
    %cst_19 = arith.constant dense<0> : vector<2x1024xi32>
    %22 = arith.cmpi ne, %20, %cst_19 : vector<2x1024xi32>
    tpu.vector_store %arg7[%c0_17, %c0_18], %21 {strides = array<i32>} : memref<2x1024xi32, #tpu.memory_space<vmem>>, vector<2x1024xi32>,
    %cst_20 = arith.constant 2.000000e+00 : f32
    %23 = vector.broadcast %cst_20 : f32 to vector<2x1024xf32>
    %24 = arith.cmpf oeq, %0, %23 : vector<2x1024xf32>
    %c0_21 = arith.constant 0 : index
    %c0_22 = arith.constant 0 : index
    %25 = vector.load %arg8[%c0_21, %c0_22] : memref<2x1024xi32, #tpu.memory_space<vmem>>, vector<2x1024xi32>
    %26 = arith.extui %24 : vector<2x1024xi1> to vector<2x1024xi32>
    %cst_23 = arith.constant dense<0> : vector<2x1024xi32>
    %27 = arith.cmpi ne, %25, %cst_23 : vector<2x1024xi32>
    tpu.vector_store %arg8[%c0_21, %c0_22], %26 {strides = array<i32>} : memref<2x1024xi32, #tpu.memory_space<vmem>>, vector<2x1024xi32>,
    return
  }
  func.func @transform_0(%arg0: i32) -> (i32, i32) {
    %c0_i32 = arith.constant 0 : i32
    %c0_i32_0 = arith.constant 0 : i32
    return %arg0, %c0_i32 : i32, i32
  }
  func.func @transform_1(%arg0: i32) -> (i32, i32) {
    %c0_i32 = arith.constant 0 : i32
    %c0_i32_0 = arith.constant 0 : i32
    return %arg0, %c0_i32 : i32, i32
  }
  func.func @transform_2(%arg0: i32) -> (i32, i32) {
    %c0_i32 = arith.constant 0 : i32
    %c0_i32_0 = arith.constant 0 : i32
    return %arg0, %c0_i32 : i32, i32
  }
  func.func @transform_3(%arg0: i32) -> (i32, i32) {
    %c0_i32 = arith.constant 0 : i32
    %c0_i32_0 = arith.constant 0 : i32
    return %arg0, %c0_i32 : i32, i32
  }
  func.func @transform_4(%arg0: i32) -> (i32, i32) {
    %c0_i32 = arith.constant 0 : i32
    %c0_i32_0 = arith.constant 0 : i32
    return %arg0, %c0_i32 : i32, i32
  }
  func.func @transform_5(%arg0: i32) -> (i32, i32) {
    %c0_i32 = arith.constant 0 : i32
    %c0_i32_0 = arith.constant 0 : i32
    return %arg0, %c0_i32 : i32, i32
  }
  func.func @transform_6(%arg0: i32) -> (i32, i32) {
    %c0_i32 = arith.constant 0 : i32
    %c0_i32_0 = arith.constant 0 : i32
    return %arg0, %c0_i32 : i32, i32
  }
  func.func @transform_7(%arg0: i32) -> (i32, i32) {
    %c0_i32 = arith.constant 0 : i32
    %c0_i32_0 = arith.constant 0 : i32
    return %arg0, %c0_i32 : i32, i32
  }
}

module attributes {stable_mosaic.version = 11 : i64} {
  func.func @kernel(%arg0: i32, %arg1: memref<2x1024xf32, #tpu.memory_space<vmem>>, %arg2: memref<2x1024xf32, #tpu.memory_space<vmem>>, %arg3: memref<2x1024xf32, #tpu.memory_space<vmem>>, %arg4: memref<2x1024xf32, #tpu.memory_space<vmem>>, %arg5: memref<2x1024xf32, #tpu.memory_space<vmem>>, %arg6: memref<2x1024xi8, #tpu.memory_space<vmem>>, %arg7: memref<2x1024xi8, #tpu.memory_space<vmem>>, %arg8: memref<2x1024xi8, #tpu.memory_space<vmem>>) attributes {dimension_semantics = [#tpu.dimension_semantics<parallel>], iteration_bounds = array<i64: 1>, scalar_prefetch = 0 : i64, scratch_operands = 0 : i64, tpu.core_type = #tpu.core_type<tc>, window_params = [{transform_indices = @transform_0, window_bounds = array<i64: 2, 1024>}, {transform_indices = @transform_1, window_bounds = array<i64: 2, 1024>}, {transform_indices = @transform_2, window_bounds = array<i64: 2, 1024>}, {transform_indices = @transform_3, window_bounds = array<i64: 2, 1024>}, {transform_indices = @transform_4, window_bounds = array<i64: 2, 1024>}, {transform_indices = @transform_5, window_bounds = array<i64: 2, 1024>}, {transform_indices = @transform_6, window_bounds = array<i64: 2, 1024>}, {transform_indices = @transform_7, window_bounds = array<i64: 2, 1024>}]} {
    %c0 = arith.constant 0 : index
    %c0_0 = arith.constant 0 : index
    %0 = vector.load %arg1[%c0, %c0_0] : memref<2x1024xf32, #tpu.memory_space<vmem>>, vector<2x1024xf32>
    %cst = arith.constant 2.000000e+00 : f32
    %1 = vector.broadcast %cst : f32 to vector<2x1024xf32>
    %2 = arith.addf %0, %1 : vector<2x1024xf32>
    %c0_1 = arith.constant 0 : index
    %c0_2 = arith.constant 0 : index
    %3 = vector.load %arg2[%c0_1, %c0_2] : memref<2x1024xf32, #tpu.memory_space<vmem>>, vector<2x1024xf32>
    tpu.vector_store %arg2[%c0_1, %c0_2], %2 {strides = array<i32>} : memref<2x1024xf32, #tpu.memory_space<vmem>>, vector<2x1024xf32>,
    %cst_3 = arith.constant 2.000000e+00 : f32
    %4 = vector.broadcast %cst_3 : f32 to vector<2x1024xf32>
    %5 = arith.subf %0, %4 : vector<2x1024xf32>
    %c0_4 = arith.constant 0 : index
    %c0_5 = arith.constant 0 : index
    %6 = vector.load %arg3[%c0_4, %c0_5] : memref<2x1024xf32, #tpu.memory_space<vmem>>, vector<2x1024xf32>
    tpu.vector_store %arg3[%c0_4, %c0_5], %5 {strides = array<i32>} : memref<2x1024xf32, #tpu.memory_space<vmem>>, vector<2x1024xf32>,
    %cst_6 = arith.constant 2.000000e+00 : f32
    %7 = vector.broadcast %cst_6 : f32 to vector<2x1024xf32>
    %8 = arith.mulf %0, %7 : vector<2x1024xf32>
    %c0_7 = arith.constant 0 : index
    %c0_8 = arith.constant 0 : index
    %9 = vector.load %arg4[%c0_7, %c0_8] : memref<2x1024xf32, #tpu.memory_space<vmem>>, vector<2x1024xf32>
    tpu.vector_store %arg4[%c0_7, %c0_8], %8 {strides = array<i32>} : memref<2x1024xf32, #tpu.memory_space<vmem>>, vector<2x1024xf32>,
    %cst_9 = arith.constant 5.000000e-01 : f32
    %10 = vector.broadcast %cst_9 : f32 to vector<2x1024xf32>
    %11 = arith.mulf %0, %10 : vector<2x1024xf32>
    %c0_10 = arith.constant 0 : index
    %c0_11 = arith.constant 0 : index
    %12 = vector.load %arg5[%c0_10, %c0_11] : memref<2x1024xf32, #tpu.memory_space<vmem>>, vector<2x1024xf32>
    tpu.vector_store %arg5[%c0_10, %c0_11], %11 {strides = array<i32>} : memref<2x1024xf32, #tpu.memory_space<vmem>>, vector<2x1024xf32>,
    %cst_12 = arith.constant 3.000000e+00 : f32
    %13 = vector.broadcast %cst_12 : f32 to vector<2x1024xf32>
    %14 = arith.cmpf ogt, %0, %13 : vector<2x1024xf32>
    %15 = arith.extui %14 : vector<2x1024xi1> to vector<2x1024xi8>
    %c0_13 = arith.constant 0 : index
    %c0_14 = arith.constant 0 : index
    %16 = vector.load %arg6[%c0_13, %c0_14] : memref<2x1024xi8, #tpu.memory_space<vmem>>, vector<2x1024xi8>
    tpu.vector_store %arg6[%c0_13, %c0_14], %15 {strides = array<i32>} : memref<2x1024xi8, #tpu.memory_space<vmem>>, vector<2x1024xi8>,
    %cst_15 = arith.constant 3.000000e+00 : f32
    %17 = vector.broadcast %cst_15 : f32 to vector<2x1024xf32>
    %18 = arith.cmpf olt, %0, %17 : vector<2x1024xf32>
    %19 = arith.extui %18 : vector<2x1024xi1> to vector<2x1024xi8>
    %c0_16 = arith.constant 0 : index
    %c0_17 = arith.constant 0 : index
    %20 = vector.load %arg7[%c0_16, %c0_17] : memref<2x1024xi8, #tpu.memory_space<vmem>>, vector<2x1024xi8>
    tpu.vector_store %arg7[%c0_16, %c0_17], %19 {strides = array<i32>} : memref<2x1024xi8, #tpu.memory_space<vmem>>, vector<2x1024xi8>,
    %cst_18 = arith.constant 2.000000e+00 : f32
    %21 = vector.broadcast %cst_18 : f32 to vector<2x1024xf32>
    %22 = arith.cmpf oeq, %0, %21 : vector<2x1024xf32>
    %23 = arith.extui %22 : vector<2x1024xi1> to vector<2x1024xi8>
    %c0_19 = arith.constant 0 : index
    %c0_20 = arith.constant 0 : index
    %24 = vector.load %arg8[%c0_19, %c0_20] : memref<2x1024xi8, #tpu.memory_space<vmem>>, vector<2x1024xi8>
    tpu.vector_store %arg8[%c0_19, %c0_20], %23 {strides = array<i32>} : memref<2x1024xi8, #tpu.memory_space<vmem>>, vector<2x1024xi8>,
    return
  }
  func.func @transform_0(%arg0: i32) -> (i32, i32) {
    %c0_i32 = arith.constant 0 : i32
    %c0_i32_0 = arith.constant 0 : i32
    return %arg0, %c0_i32 : i32, i32
  }
  func.func @transform_1(%arg0: i32) -> (i32, i32) {
    %c0_i32 = arith.constant 0 : i32
    %c0_i32_0 = arith.constant 0 : i32
    return %arg0, %c0_i32 : i32, i32
  }
  func.func @transform_2(%arg0: i32) -> (i32, i32) {
    %c0_i32 = arith.constant 0 : i32
    %c0_i32_0 = arith.constant 0 : i32
    return %arg0, %c0_i32 : i32, i32
  }
  func.func @transform_3(%arg0: i32) -> (i32, i32) {
    %c0_i32 = arith.constant 0 : i32
    %c0_i32_0 = arith.constant 0 : i32
    return %arg0, %c0_i32 : i32, i32
  }
  func.func @transform_4(%arg0: i32) -> (i32, i32) {
    %c0_i32 = arith.constant 0 : i32
    %c0_i32_0 = arith.constant 0 : i32
    return %arg0, %c0_i32 : i32, i32
  }
  func.func @transform_5(%arg0: i32) -> (i32, i32) {
    %c0_i32 = arith.constant 0 : i32
    %c0_i32_0 = arith.constant 0 : i32
    return %arg0, %c0_i32 : i32, i32
  }
  func.func @transform_6(%arg0: i32) -> (i32, i32) {
    %c0_i32 = arith.constant 0 : i32
    %c0_i32_0 = arith.constant 0 : i32
    return %arg0, %c0_i32 : i32, i32
  }
  func.func @transform_7(%arg0: i32) -> (i32, i32) {
    %c0_i32 = arith.constant 0 : i32
    %c0_i32_0 = arith.constant 0 : i32
    return %arg0, %c0_i32 : i32, i32
  }
}

</mosaic_0001>

<bundles_post_ra>
// kernel: tpu_custom_call.1
= control target key start
LH: loop header
LB: loop body
LE: loop exit
PB: predicated region body
PF: predicated region fallthrough
CT: control target
= control target key end

     0   :  { %13 = vsyncpa [#allocation3], 0  ;;  %s368_s0 = inlined_call_operand.hbm [shape: f32[2,1024], index: 0, kind: input, shape index: {}]   ;;  %s369_s1 = inlined_call_operand.hbm [shape: f32[2,1024], index: 1, kind: output, shape index: {0}]   ;;  %s370_s2 = inlined_call_operand.hbm [shape: f32[2,1024], index: 2, kind: output, shape index: {1}]   ;;  %s371_s3 = inlined_call_operand.hbm [shape: f32[2,1024], index: 3, kind: output, shape index: {2}]   ;;  %s372_s4 = inlined_call_operand.hbm [shape: f32[2,1024], index: 4, kind: output, shape index: {3}]   ;;  %s373_s5 = inlined_call_operand.vmem [shape: s32[2,1024], index: 5, kind: output, shape index: {4}]   ;;  %s374_s6 = inlined_call_operand.vmem [shape: s32[2,1024], index: 6, kind: output, shape index: {5}]   ;;  %s375_s7 = inlined_call_operand.vmem [shape: s32[2,1024], index: 7, kind: output, shape index: {6}]  }
   0x1   :  { %14 = vsyncpa [#allocation4], 0 }
   0x2   :  { %15 = vsyncpa [#allocation7], 0 }
   0x3   :  { %16 = vsyncpa [#allocation10], 0  ;;  %s22_s26 = sshll.u32 %s368_s0, 4  ;;  %s280_s27 = smov [#allocation2]   ;;  %s23_s26 = int_to_ptr.hbm [resolvable:$true] %s22_s26 }
   0x4   :  { %s24_s28 = sshll.u32 %s280_s27, 4  ;;  %s25_s28 = int_to_ptr.vmem [resolvable:$true] %s24_s28 }
   0x5   :  { %27 = dma.hbm_to_vmem [thread:$0]  %s23_s26, 256, %s25_s28, [#allocation3]  }
   0x6   :  { %272 = dma.done.wait [#allocation3], 256  }
   0x7   :  { %273 = vsyncadd [#allocation3], 4294967040  ;;  %s86_s8 = sshll.u32 %s370_s2, 4  ;;  %s281_s9 = smov [#allocation6]   ;;  %v32_v0 = vld [vmem:[#allocation2] sm:$0xff]  ;;  %v33_v1 = vld [vmem:[#allocation2 + $0x8] sm:$0xff]  ;;  %s87_s8 = int_to_ptr.hbm [resolvable:$true] %s86_s8 }
   0x8   :  { %s84_s10 = sshll.u32 %s281_s9, 4  ;;  %s282_s11 = smov [#allocation5]   ;;  %v144_v2 = vadd.f32 -2.0, %v32_v0  ;;  %v145_v3 = vadd.f32 -2.0, %v33_v1  ;;  %v34_v4 = vadd.f32 2.0, %v32_v0  ;;  %v35_v5 = vadd.f32 2.0, %v33_v1  ;;  %s85_s10 = int_to_ptr.vmem [resolvable:$true] %s84_s10 }
   0x9   :  { %s332_s12 = sshll.u32 %s282_s11, 4  ;;  %s75_s0 = sshll.u32 %s369_s1, 4  ;;  %v42_v6 = vmul.f32 2.0, %v32_v0  ;;  %v43_v7 = vmul.f32 2.0, %v33_v1  ;;  %v46_v8 = vmul.f32 0.5, %v32_v0  ;;  %vm50_vm0 = vcmp.gt.f32.partialorder %v32_v0, 3.0  ;;  %s74_s12 = int_to_ptr.vmem [resolvable:$true] %s332_s12  ;;  %s76_s0 = int_to_ptr.hbm [resolvable:$true] %s75_s0 }
   0xa   :  { %40 = vst [vmem:[#allocation6] sm:$0xff] %v144_v2  ;;  %s283_s2 = smov [#allocation8]   ;;  %s97_s1 = sshll.u32 %s371_s3, 4  ;;  %v47_v9 = vmul.f32 0.5, %v33_v1  ;;  %vm51_vm1 = vcmp.gt.f32.partialorder %v33_v1, 3.0  ;;  %vm56_vm2 = vcmp.lt.f32.partialorder %v32_v0, 3.0  ;;  %s98_s1 = int_to_ptr.hbm [resolvable:$true] %s97_s1 }
   0xb   :  { %s338_s15 = sshll.u32 %s283_s2, 4  ;;  %41 = vst [vmem:[#allocation6 + $0x8] sm:$0xff] %v145_v3  ;;  %s284_s18 = smov [#allocation9]   ;;  %v285_v10 = vmov 0   ;;  %vm57_vm3 = vcmp.lt.f32.partialorder %v33_v1, 3.0  ;;  %vm62_vm4 = vcmp.eq.f32.partialorder %v32_v0, 2.0  ;;  %s96_s15 = int_to_ptr.vmem [resolvable:$true] %s338_s15 }
   0xc   :  { %s343_s19 = sshll.u32 %s284_s18, 4  ;;  %s108_s22 = sshll.u32 %s372_s4, 4  ;;  %36 = vst [vmem:[#allocation5] sm:$0xff] %v34_v4  ;;  %v52_v11 = vsel %vm50_vm0, 1, %v285_v10  ;;  %v53_v12 = vsel %vm51_vm1, 1, %v285_v10  ;;  %v58_v13 = vsel %vm56_vm2, 1, %v285_v10  ;;  %s107_s19 = int_to_ptr.vmem [resolvable:$true] %s343_s19  ;;  %s109_s22 = int_to_ptr.hbm [resolvable:$true] %s108_s22 }
   0xd   :  { %89 = dma.vmem_to_hbm [thread:$0]  %s85_s10, 256, %s87_s8, [#allocation7]   ;;  %37 = vst [vmem:[#allocation5 + $0x8] sm:$0xff] %v35_v5  ;;  %vm63_vm5 = vcmp.eq.f32.partialorder %v33_v1, 2.0  ;;  %v59_v14 = vsel %vm57_vm3, 1, %v285_v10  ;;  %v64_v15 = vsel %vm62_vm4, 1, %v285_v10 }
   0xe   :  { %44 = vst [vmem:[#allocation8] sm:$0xff] %v42_v6  ;;  %78 = dma.vmem_to_hbm [thread:$0]  %s74_s12, 256, %s76_s0, [#allocation4]   ;;  %v65_v16 = vsel %vm63_vm5, 1, %v285_v10 }
   0xf   :  { %45 = vst [vmem:[#allocation8 + $0x8] sm:$0xff] %v43_v7 }
  0x10   :  { %48 = vst [vmem:[#allocation9] sm:$0xff] %v46_v8  ;;  %100 = dma.vmem_to_hbm [thread:$0]  %s96_s15, 256, %s98_s1, [#allocation7]  }
  0x11   :  { %49 = vst [vmem:[#allocation9 + $0x8] sm:$0xff] %v47_v9 }
  0x12   :  { %54 = vst [vmem:[%s373_s5] sm:$0xff] %v52_v11  ;;  %111 = dma.vmem_to_hbm [thread:$0]  %s107_s19, 256, %s109_s22, [#allocation10]  }
  0x13   :  { %55 = vst [vmem:[%s373_s5 + $0x8] sm:$0xff] %v53_v12 }
  0x14   :  { %60 = vst [vmem:[%s374_s6] sm:$0xff] %v58_v13 }
  0x15   :  { %61 = vst [vmem:[%s374_s6 + $0x8] sm:$0xff] %v59_v14 }
  0x16   :  { %66 = vst [vmem:[%s375_s7] sm:$0xff] %v64_v15 }
  0x17   :  { %67 = vst [vmem:[%s375_s7 + $0x8] sm:$0xff] %v65_v16 }
  0x18   :  { %274 = dma.done.wait [#allocation4], 256  }
  0x19   :  { %275 = vsyncadd [#allocation4], 4294967040 }
  0x1a   :  { %276 = dma.done.wait [#allocation7], 512  }
  0x1b   :  { %277 = vsyncadd [#allocation7], 4294966784 }
  0x1c   :  { %278 = dma.done.wait [#allocation10], 256  }
  0x1d   :  { %279 = vsyncadd [#allocation10], 4294967040 }
  0x1e   :  { %140 = vsyncpa [#allocation3], 1 }
  0x1f   :  { %141 = vsyncpa [#allocation4], 1 }
  0x20   :  { %142 = vsyncpa [#allocation7], 1 }
  0x21   :  { %143 = vsyncpa [#allocation10], 1 }

// kernel: tpu_custom_call.1
= control target key start
LH: loop header
LB: loop body
LE: loop exit
PB: predicated region body
PF: predicated region fallthrough
CT: control target
= control target key end

     0   :  { %13 = vsyncpa [#allocation3], 0  ;;  %s910_s0 = inlined_call_operand.hbm [shape: f32[2,1024], index: 0, kind: input, shape index: {}]   ;;  %s911_s1 = inlined_call_operand.hbm [shape: f32[2,1024], index: 1, kind: output, shape index: {0}]   ;;  %s912_s2 = inlined_call_operand.hbm [shape: f32[2,1024], index: 2, kind: output, shape index: {1}]   ;;  %s913_s3 = inlined_call_operand.hbm [shape: f32[2,1024], index: 3, kind: output, shape index: {2}]   ;;  %s914_s4 = inlined_call_operand.hbm [shape: f32[2,1024], index: 4, kind: output, shape index: {3}]   ;;  %s915_s5 = inlined_call_operand.hbm [shape: s8[2,1024], index: 5, kind: output, shape index: {4}]   ;;  %s916_s6 = inlined_call_operand.hbm [shape: s8[2,1024], index: 6, kind: output, shape index: {5}]   ;;  %s917_s7 = inlined_call_operand.hbm [shape: s8[2,1024], index: 7, kind: output, shape index: {6}]  }
   0x1   :  { %14 = vsyncpa [#allocation4], 0 }
   0x2   :  { %15 = vsyncpa [#allocation7], 0 }
   0x3   :  { %16 = vsyncpa [#allocation10], 0 }
   0x4   :  { %17 = vsyncpa [#allocation13], 0  ;;  %s23_s26 = sshll.u32 %s910_s0, 4  ;;  %s666_s27 = smov [#allocation2]   ;;  %s24_s26 = int_to_ptr.hbm [resolvable:$true] %s23_s26 }
   0x5   :  { %s25_s28 = sshll.u32 %s666_s27, 4  ;;  %s26_s28 = int_to_ptr.vmem [resolvable:$true] %s25_s28 }
   0x6   :  { %28 = dma.hbm_to_vmem [thread:$0]  %s24_s26, 256, %s26_s28, [#allocation3]  }
   0x7   :  { %656 = dma.done.wait [#allocation3], 256  }
   0x8   :  { %657 = vsyncadd [#allocation3], 4294967040  ;;  %v718_v0 = vld [vmem:[#allocation2] sm:$0xff]  ;;  %v720_v1 = vld [vmem:[#allocation2 + $0x8] sm:$0xff]  ;;  %v667_v2 = vmov 0   ;;  %vm920_vm2 = vcmask 1040384  }
   0x9   :  { %vm53_vm0 = vcmp.gt.f32.partialorder %v718_v0, 3.0  ;;  %vm54_vm1 = vcmp.gt.f32.partialorder %v720_v1, 3.0  ;;  %vm142_vm3 = vsmask.f32 256  ;;  %vm144_vm4 = vcmask 1041409   ;;  %s361_s30 = sshll.u32 %s912_s2, 4  ;;  %s822_s30 = int_to_ptr.hbm [resolvable:$true] %s361_s30 }
   0xa   :  { %v55_v3 = vsel %vm53_vm0, 1, %v667_v2  ;;  %v56_v4 = vsel %vm54_vm1, 1, %v667_v2  ;;  %vm145_vm5 = vsmask.f32 1280  ;;  %vm727_vm6 = vmand %vm920_vm2, %vm142_vm3  ;;  %vm918_vm8 = vcmask 1042434   ;;  %s668_s8 = smov [#allocation6]  }
   0xb   :  { %57 = vst [vmem:[#allocation1] ss:$2 sm:$0xff] %v55_v3  ;;  %vm731_vm7 = vmand %vm144_vm4, %vm145_vm5  ;;  %vm149_vm9 = vsmask.f32 2304  ;;  %vm152_vm10 = vcmask 1043459   ;;  %vm919_vm5 = vcmask 1044484  }
   0xc   :  { %59 = vst [vmem:[#allocation1 + $0x10] ss:$2 sm:$0xff] %v56_v4  ;;  %vm153_vm11 = vsmask.f32 3328  ;;  %vm147_vm12 = vmor %vm731_vm7, %vm727_vm6  ;;  %vm157_vm6 = vsmask.f32 4352 }
   0xd   :  { %vm150_vm13 = vmand %vm918_vm8, %vm149_vm9  ;;  %s792_s9 = sshll.u32 %s668_s8, 4  ;;  %s669_s10 = smov [#allocation9]   ;;  %v172_v49 = vld [vmem:[#allocation11] sm:$0xff]  ;;  %v453_v6 = vadd.f32 -2.0, %v718_v0  ;;  %s360_s9 = int_to_ptr.vmem [resolvable:$true] %s792_s9 }
   0xe   :  { %vm151_vm3 = vmor %vm150_vm13, %vm147_vm12  ;;  %vm132_vm12 = vcmask 1046534   ;;  %s794_s11 = sshll.u32 %s669_s10, 4  ;;  %s383_s14 = sshll.u32 %s914_s4, 4  ;;  %s382_s11 = int_to_ptr.vmem [resolvable:$true] %s794_s11  ;;  %s384_s14 = int_to_ptr.hbm [resolvable:$true] %s383_s14 }
   0xf   :  { %vm154_vm4 = vmand %vm152_vm10, %vm153_vm11  ;;  %vm176_vm10 = vcmp.lt.f32.partialorder %v720_v1, 3.0  ;;  %s670_s15 = smov [#allocation5]   ;;  %s350_s21 = sshll.u32 %s911_s1, 4  ;;  %43 = vst [vmem:[#allocation6] sm:$0xff] %v453_v6  ;;  %s351_s21 = int_to_ptr.hbm [resolvable:$true] %s350_s21 }
  0x10   :  { %vm155_vm9 = vmor %vm154_vm4, %vm151_vm3  ;;  %v178_v22 = vsel %vm176_vm10, 1, %v667_v2  ;;  %vm165_vm3 = vsmask.f32 6400  ;;  %s800_s16 = sshll.u32 %s670_s15, 4  ;;  %s671_s2 = smov [#allocation11]   ;;  %s349_s16 = int_to_ptr.vmem [resolvable:$true] %s800_s16 }
  0x11   :  { %vm166_vm4 = vmand %vm132_vm12, %vm165_vm3  ;;  %s835_s22 = sshll.u32 %s671_s2, 4  ;;  %s394_s25 = sshll.u32 %s915_s5, 4  ;;  %s393_s22 = int_to_ptr.vmem [resolvable:$true] %s835_s22  ;;  %s395_s25 = int_to_ptr.hbm [resolvable:$true] %s394_s25 }
  0x12   :  { %v60_v7 = vld.sshfl [vmem:[#allocation1] sm:$0xff pattern:$0x75643120]  ;;  %v61_v8 = vld.sshfl [vmem:[#allocation1 + $0x8] sm:$0xff pattern:$0x75643120] }
  0x13   :  { %v62_v9 = vld.sshfl [vmem:[#allocation1 + $0x10] sm:$0xff pattern:$0x75643120]  ;;  %v63_v10 = vld.sshfl [vmem:[#allocation1 + $0x18] sm:$0xff pattern:$0x75643120] }
  0x14   :  { %vm64_vm14 = vcmp.ne.s32.totalorder %v60_v7, 0  ;;  %vm65_vm15 = vcmp.ne.s32.totalorder %v61_v8, 0  ;;  %vm66_vm0 = vcmp.ne.s32.totalorder %v62_v9, 0  ;;  %vm67_vm1 = vcmp.ne.s32.totalorder %v63_v10, 0  ;;  %s672_s4 = smov [#allocation8]   ;;  %s372_s0 = sshll.u32 %s913_s3, 4  ;;  %s373_s0 = int_to_ptr.hbm [resolvable:$true] %s372_s0 }
  0x15   :  { %v68_v11 = vsel %vm64_vm14, 1, %v667_v2  ;;  %v69_v12 = vsel %vm65_vm15, 1, %v667_v2  ;;  %v70_v13 = vsel %vm66_vm0, 1, %v667_v2  ;;  %v71_v14 = vsel %vm67_vm1, 1, %v667_v2  ;;  %vm158_vm14 = vmand %vm919_vm5, %vm157_vm6  ;;  %s370_s5 = sshll.u32 %s672_s4, 4  ;;  %s673_s3 = smov [#allocation12]   ;;  %s371_s5 = int_to_ptr.vmem [resolvable:$true] %s370_s5 }
  0x16   :  { %v72_v15 = vpack.c.b16 %v69_v12, %v68_v11  ;;  %v73_v16 = vpack.c.b16 %v71_v14, %v70_v13  ;;  %vm160_vm15 = vcmask 1045509   ;;  %vm161_vm0 = vsmask.f32 5376  ;;  %vm749_vm8 = vmor %vm158_vm14, %vm155_vm9  ;;  %s403_s29 = sshll.u32 %s673_s3, 4  ;;  %s416_s13 = sshll.u32 %s917_s7, 4  ;;  %s404_s29 = int_to_ptr.vmem [resolvable:$true] %s403_s29  ;;  %s417_s13 = int_to_ptr.hbm [resolvable:$true] %s416_s13 }
  0x17   :  { %vm175_vm1 = vcmp.lt.f32.partialorder %v718_v0, 3.0  ;;  %vm754_vm11 = vmand %vm160_vm15, %vm161_vm0  ;;  %vm169_vm6 = vsmask.f32 7424  ;;  %vm168_vm15 = vcmask 1047559   ;;  %v454_v7 = vadd.f32 -2.0, %v720_v1 }
  0x18   :  { %v74_v17 = vpack.c.b8 %v73_v16, %v72_v15  ;;  %v177_v21 = vsel %vm175_vm1, 1, %v667_v2  ;;  %vm163_vm13 = vmor %vm754_vm11, %vm749_vm8  ;;  %vm136_vm8 = vcmask 1045508   ;;  %vm138_vm11 = vcmask 1043456  }
  0x19   :  { %vm782_vm3 = vmor %vm166_vm4, %vm163_vm13  ;;  %vm934_vm13 = vcmask 1042434   ;;  %vm935_vm4 = vcmask 1044484   ;;  %v49_v9 = vmul.f32 0.5, %v718_v0  ;;  %v50_v10 = vmul.f32 0.5, %v720_v1  ;;  %44 = vst [vmem:[#allocation6 + $0x8] sm:$0xff] %v454_v7 }
  0x1a   :  { %vm75_vm7 = vnez %v74_v17  ;;  %v37_v11 = vadd.f32 2.0, %v718_v0  ;;  %v38_v13 = vadd.f32 2.0, %v720_v1  ;;  %364 = dma.vmem_to_hbm [thread:$0]  %s360_s9, 256, %s822_s30, [#allocation7]   ;;  %v45_v14 = vmul.f32 2.0, %v718_v0 }
  0x1b   :  { %v76_v18 = vsel %vm75_vm7, 16843009, %v667_v2  ;;  %51 = vst [vmem:[#allocation9] sm:$0xff] %v49_v9  ;;  %v46_v16 = vmul.f32 2.0, %v720_v1  ;;  %s405_s9 = sshll.u32 %s916_s6, 4  ;;  %s674_s6 = smov [#allocation14]   ;;  %s406_s9 = int_to_ptr.hbm [resolvable:$true] %s405_s9 }
  0x1c   :  { %78 = vst [vmem:[#allocation1] ss:$9 sm:$0xff] %v76_v18  ;;  %s414_s10 = sshll.u32 %s674_s6, 4  ;;  %s415_s10 = int_to_ptr.vmem [resolvable:$true] %s414_s10 }
  0x1d   :  { %52 = vst [vmem:[#allocation9 + $0x8] sm:$0xff] %v50_v10 }
  0x1e   :  { %39 = vst [vmem:[#allocation5] sm:$0xff] %v37_v11  ;;  %386 = dma.vmem_to_hbm [thread:$0]  %s382_s11, 256, %s384_s14, [#allocation10]  }
  0x1f   :  { %40 = vst [vmem:[#allocation5 + $0x8] sm:$0xff] %v38_v13 }
  0x20   :  { %47 = vst [vmem:[#allocation8] sm:$0xff] %v45_v14  ;;  %353 = dma.vmem_to_hbm [thread:$0]  %s349_s16, 256, %s351_s21, [#allocation4]  }
  0x21   :  { %48 = vst [vmem:[#allocation8 + $0x8] sm:$0xff] %v46_v16 }
  0x22   :  { %375 = dma.vmem_to_hbm [thread:$0]  %s371_s5, 256, %s373_s0, [#allocation7]  }
  0x23   :  { %v79_v23 = vld [vmem:[#allocation1] sm:$0xff]  ;;  %v81_v24 = vld [vmem:[#allocation1 + $0x9] sm:$0xff]  ;;  %v83_v25 = vld [vmem:[#allocation1 + $0x12] sm:$0xff] }
  0x24   :  { %179 = vst [vmem:[#allocation1] ss:$2 sm:$0xff] %v177_v21  ;;  %v85_v26 = vld [vmem:[#allocation1 + $0x1b] sm:$0xff]  ;;  %v87_v27 = vld [vmem:[#allocation1 + $0x24] sm:$0xff]  ;;  %v89_v28 = vld [vmem:[#allocation1 + $0x2d] sm:$0xff]  ;;  %vm95_vm7 = vnez %v79_v23  ;;  %vm96_vm9 = vnez %v81_v24  ;;  %vm97_vm14 = vnez %v83_v25 }
  0x25   :  { %181 = vst [vmem:[#allocation1 + $0x10] ss:$2 sm:$0xff] %v178_v22  ;;  %v91_v29 = vld [vmem:[#allocation1 + $0x36] sm:$0xff]  ;;  %v93_v30 = vld [vmem:[#allocation1 + $0x3f] sm:$0xff]  ;;  %vm98_vm0 = vnez %v85_v26  ;;  %vm99_vm1 = vnez %v87_v27  ;;  %vm100_vm10 = vnez %v89_v28  ;;  %v103_v31 = vsel %vm95_vm7, 16843009, %v667_v2 }
  0x26   :  { %vm101_vm5 = vnez %v91_v29  ;;  %vm102_vm2 = vnez %v93_v30  ;;  %v104_v32 = vsel %vm96_vm9, 16843009, %v667_v2  ;;  %v105_v33 = vsel %vm97_vm14, 16843009, %v667_v2 }
  0x27   :  { %v106_v34 = vsel %vm98_vm0, 16843009, %v667_v2  ;;  %v107_v35 = vsel %vm99_vm1, 16843009, %v667_v2  ;;  %v108_v36 = vsel %vm100_vm10, 16843009, %v667_v2 }
  0x28   :  { %v109_v37 = vsel %vm101_vm5, 16843009, %v667_v2  ;;  %v110_v38 = vsel %vm102_vm2, 16843009, %v667_v2  ;;  %v111_v39 = vrot.slane %v104_v32, 7  ;;  %v112_v40 = vrot.slane %v105_v33, 6  ;;  %vm788_vm5 = vmand %vm168_vm15, %vm169_vm6 }
  0x29   :  { %v113_v42 = vrot.slane %v106_v34, 5  ;;  %v114_v43 = vrot.slane %v107_v35, 4  ;;  %v115_v44 = vrot.slane %v108_v36, 3  ;;  %v116_v45 = vrot.slane %v109_v37, 2  ;;  %vm810_vm14 = vmor %vm788_vm5, %vm782_vm3 }
  0x2a   :  { %v117_v47 = vrot.slane %v110_v38, 1  ;;  %vm933_vm2 = vcmask 1040384   ;;  %vm936_vm9 = vcmask 1041408   ;;  %vm259_vm10 = vcmp.eq.f32.partialorder %v718_v0, 2.0 }
  0x2b   :  { %v121_v48 = vsel %vm933_vm2, %v103_v31, %v111_v39  ;;  %v182_v50 = vld.sshfl [vmem:[#allocation1] sm:$0xff pattern:$0x75643120]  ;;  %v183_v51 = vld.sshfl [vmem:[#allocation1 + $0x8] sm:$0xff pattern:$0x75643120]  ;;  %v125_v52 = vsel %vm934_vm13, %v112_v40, %v113_v42  ;;  %v131_v53 = vsel %vm935_vm4, %v114_v43, %v115_v44 }
  0x2c   :  { %vm186_vm6 = vcmp.ne.s32.totalorder %v182_v50, 0  ;;  %vm187_vm7 = vcmp.ne.s32.totalorder %v183_v51, 0  ;;  %v184_v54 = vld.sshfl [vmem:[#allocation1 + $0x10] sm:$0xff pattern:$0x75643120]  ;;  %v127_v55 = vsel %vm936_vm9, %v121_v48, %v125_v52  ;;  %v135_v56 = vsel %vm132_vm12, %v116_v45, %v117_v47 }
  0x2d   :  { %v190_v58 = vsel %vm186_vm6, 1, %v667_v2  ;;  %v191_v59 = vsel %vm187_vm7, 1, %v667_v2  ;;  %v185_v60 = vld.sshfl [vmem:[#allocation1 + $0x18] sm:$0xff pattern:$0x75643120]  ;;  %vm188_vm15 = vcmp.ne.s32.totalorder %v184_v54, 0  ;;  %v137_v61 = vsel %vm136_vm8, %v131_v53, %v135_v56 }
  0x2e   :  { %v194_v62 = vpack.c.b16 %v191_v59, %v190_v58  ;;  %vm189_vm0 = vcmp.ne.s32.totalorder %v185_v60, 0  ;;  %v192_v63 = vsel %vm188_vm15, 1, %v667_v2  ;;  %v139_v3 = vsel %vm138_vm11, %v127_v55, %v137_v61  ;;  %v256_v53 = vld [vmem:[#allocation12] sm:$0xff] }
  0x2f   :  { %v193_v4 = vsel %vm189_vm0, 1, %v667_v2  ;;  %v173_v5 = vsel %vm810_vm14, %v139_v3, %v172_v49  ;;  %vm260_vm3 = vcmp.eq.f32.partialorder %v720_v1, 2.0  ;;  %v261_v17 = vsel %vm259_vm10, 1, %v667_v2 }
  0x30   :  { %v195_v8 = vpack.c.b16 %v193_v4, %v192_v63  ;;  %174 = vst [vmem:[#allocation11] sm:$0xff] %v173_v5  ;;  %v262_v18 = vsel %vm260_vm3, 1, %v667_v2  ;;  %vm939_vm0 = vcmask 1040384   ;;  %vm941_vm10 = vcmask 1041408  }
  0x31   :  { %397 = dma.vmem_to_hbm [thread:$0]  %s393_s22, 128, %s395_s25, [#allocation10]   ;;  %vm942_vm3 = vcmask 1044484  }
  0x32   :  { %v196_v12 = vpack.c.b8 %v195_v8, %v194_v62 }
  0x34   :  { %vm197_vm1 = vnez %v196_v12 }
  0x35   :  { %v198_v15 = vsel %vm197_vm1, 16843009, %v667_v2  ;;  %vm940_vm1 = vcmask 1042434  }
  0x36   :  { %200 = vst [vmem:[#allocation1] ss:$9 sm:$0xff] %v198_v15 }
  0x3d   :  { %v201_v19 = vld [vmem:[#allocation1] sm:$0xff]  ;;  %v203_v20 = vld [vmem:[#allocation1 + $0x9] sm:$0xff]  ;;  %v205_v21 = vld [vmem:[#allocation1 + $0x12] sm:$0xff] }
  0x3e   :  { %v207_v22 = vld [vmem:[#allocation1 + $0x1b] sm:$0xff]  ;;  %263 = vst [vmem:[#allocation1] ss:$2 sm:$0xff] %v261_v17  ;;  %v209_v23 = vld [vmem:[#allocation1 + $0x24] sm:$0xff]  ;;  %v211_v24 = vld [vmem:[#allocation1 + $0x2d] sm:$0xff]  ;;  %vm217_vm5 = vnez %v201_v19  ;;  %vm218_vm2 = vnez %v203_v20  ;;  %vm219_vm13 = vnez %v205_v21 }
  0x3f   :  { %265 = vst [vmem:[#allocation1 + $0x10] ss:$2 sm:$0xff] %v262_v18  ;;  %v213_v0 = vld [vmem:[#allocation1 + $0x36] sm:$0xff]  ;;  %v215_v25 = vld [vmem:[#allocation1 + $0x3f] sm:$0xff]  ;;  %vm220_vm4 = vnez %v207_v22  ;;  %vm221_vm6 = vnez %v209_v23  ;;  %vm222_vm7 = vnez %v211_v24  ;;  %v225_v1 = vsel %vm217_vm5, 16843009, %v667_v2 }
  0x40   :  { %vm223_vm9 = vnez %v213_v0  ;;  %vm224_vm15 = vnez %v215_v25  ;;  %v226_v26 = vsel %vm218_vm2, 16843009, %v667_v2  ;;  %v227_v27 = vsel %vm219_vm13, 16843009, %v667_v2 }
  0x41   :  { %v228_v28 = vsel %vm220_vm4, 16843009, %v667_v2  ;;  %v229_v29 = vsel %vm221_vm6, 16843009, %v667_v2  ;;  %v230_v30 = vsel %vm222_vm7, 16843009, %v667_v2 }
  0x42   :  { %v231_v31 = vsel %vm223_vm9, 16843009, %v667_v2  ;;  %v232_v32 = vsel %vm224_vm15, 16843009, %v667_v2  ;;  %v233_v33 = vrot.slane %v226_v26, 7  ;;  %v234_v34 = vrot.slane %v227_v27, 6 }
  0x43   :  { %v235_v35 = vrot.slane %v228_v28, 5  ;;  %v236_v36 = vrot.slane %v229_v29, 4  ;;  %v237_v37 = vrot.slane %v230_v30, 3  ;;  %v238_v38 = vrot.slane %v231_v31, 2  ;;  %v340_v26 = vld [vmem:[#allocation14] sm:$0xff] }
  0x44   :  { %v239_v39 = vrot.slane %v232_v32, 1  ;;  %v242_v40 = vsel %vm939_vm0, %v225_v1, %v233_v33 }
  0x45   :  { %v266_v41 = vld.sshfl [vmem:[#allocation1] sm:$0xff pattern:$0x75643120]  ;;  %v267_v42 = vld.sshfl [vmem:[#allocation1 + $0x8] sm:$0xff pattern:$0x75643120]  ;;  %v245_v43 = vsel %vm940_vm1, %v234_v34, %v235_v35  ;;  %v249_v47 = vsel %vm942_vm3, %v236_v36, %v237_v37 }
  0x46   :  { %v268_v44 = vld.sshfl [vmem:[#allocation1 + $0x10] sm:$0xff pattern:$0x75643120]  ;;  %v269_v45 = vld.sshfl [vmem:[#allocation1 + $0x18] sm:$0xff pattern:$0x75643120]  ;;  %v246_v46 = vsel %vm941_vm10, %v242_v40, %v245_v43  ;;  %v252_v48 = vsel %vm132_vm12, %v238_v38, %v239_v39 }
  0x47   :  { %vm270_vm5 = vcmp.ne.s32.totalorder %v266_v41, 0  ;;  %vm271_vm2 = vcmp.ne.s32.totalorder %v267_v42, 0  ;;  %vm272_vm13 = vcmp.ne.s32.totalorder %v268_v44, 0  ;;  %vm273_vm4 = vcmp.ne.s32.totalorder %v269_v45, 0 }
  0x48   :  { %v274_v49 = vsel %vm270_vm5, 1, %v667_v2  ;;  %v275_v50 = vsel %vm271_vm2, 1, %v667_v2  ;;  %v276_v51 = vsel %vm272_vm13, 1, %v667_v2  ;;  %v277_v52 = vsel %vm273_vm4, 1, %v667_v2 }
  0x49   :  { %v278_v54 = vpack.c.b16 %v275_v50, %v274_v49  ;;  %v279_v55 = vpack.c.b16 %v277_v52, %v276_v51  ;;  %v253_v56 = vsel %vm136_vm8, %v249_v47, %v252_v48  ;;  %vm943_vm2 = vcmask 1040384  }
  0x4a   :  { %v254_v58 = vsel %vm138_vm11, %v246_v46, %v253_v56  ;;  %vm944_vm13 = vcmask 1042434   ;;  %vm945_vm4 = vcmask 1044484  }
  0x4b   :  { %v280_v59 = vpack.c.b8 %v279_v55, %v278_v54  ;;  %v257_v60 = vsel %vm810_vm14, %v254_v58, %v256_v53 }
  0x4c   :  { %258 = vst [vmem:[#allocation12] sm:$0xff] %v257_v60 }
  0x4d   :  { %vm281_vm6 = vnez %v280_v59  ;;  %408 = dma.vmem_to_hbm [thread:$0]  %s404_s29, 128, %s406_s9, [#allocation13]  }
  0x4e   :  { %v282_v61 = vsel %vm281_vm6, 16843009, %v667_v2  ;;  %vm946_vm6 = vcmask 1041408  }
  0x4f   :  { %284 = vst [vmem:[#allocation1] ss:$9 sm:$0xff] %v282_v61 }
  0x56   :  { %v285_v62 = vld [vmem:[#allocation1] sm:$0xff]  ;;  %v287_v63 = vld [vmem:[#allocation1 + $0x9] sm:$0xff]  ;;  %v289_v3 = vld [vmem:[#allocation1 + $0x12] sm:$0xff] }
  0x57   :  { %v291_v4 = vld [vmem:[#allocation1 + $0x1b] sm:$0xff]  ;;  %v293_v5 = vld [vmem:[#allocation1 + $0x24] sm:$0xff]  ;;  %v295_v6 = vld [vmem:[#allocation1 + $0x2d] sm:$0xff]  ;;  %vm301_vm7 = vnez %v285_v62  ;;  %vm302_vm9 = vnez %v287_v63  ;;  %vm303_vm15 = vnez %v289_v3 }
  0x58   :  { %v297_v7 = vld [vmem:[#allocation1 + $0x36] sm:$0xff]  ;;  %v299_v8 = vld [vmem:[#allocation1 + $0x3f] sm:$0xff]  ;;  %vm304_vm0 = vnez %v291_v4  ;;  %vm305_vm1 = vnez %v293_v5  ;;  %vm306_vm10 = vnez %v295_v6  ;;  %v309_v9 = vsel %vm301_vm7, 16843009, %v667_v2 }
  0x59   :  { %vm307_vm3 = vnez %v297_v7  ;;  %vm308_vm5 = vnez %v299_v8  ;;  %v310_v10 = vsel %vm302_vm9, 16843009, %v667_v2  ;;  %v311_v11 = vsel %vm303_vm15, 16843009, %v667_v2 }
  0x5a   :  { %v312_v12 = vsel %vm304_vm0, 16843009, %v667_v2  ;;  %v313_v13 = vsel %vm305_vm1, 16843009, %v667_v2  ;;  %v314_v14 = vsel %vm306_vm10, 16843009, %v667_v2 }
  0x5b   :  { %v315_v15 = vsel %vm307_vm3, 16843009, %v667_v2  ;;  %v316_v16 = vsel %vm308_vm5, 16843009, %v667_v2  ;;  %v317_v17 = vrot.slane %v310_v10, 7  ;;  %v318_v18 = vrot.slane %v311_v11, 6 }
  0x5c   :  { %v319_v19 = vrot.slane %v312_v12, 5  ;;  %v320_v20 = vrot.slane %v313_v13, 4  ;;  %v321_v21 = vrot.slane %v314_v14, 3  ;;  %v322_v22 = vrot.slane %v315_v15, 2 }
  0x5d   :  { %v323_v23 = vrot.slane %v316_v16, 1  ;;  %v326_v24 = vsel %vm943_vm2, %v309_v9, %v317_v17 }
  0x5e   :  { %v329_v0 = vsel %vm944_vm13, %v318_v18, %v319_v19  ;;  %v333_v25 = vsel %vm945_vm4, %v320_v20, %v321_v21 }
  0x5f   :  { %v330_v2 = vsel %vm946_vm6, %v326_v24, %v329_v0  ;;  %v336_v1 = vsel %vm132_vm12, %v322_v22, %v323_v23 }
  0x60   :  { %v337_v27 = vsel %vm136_vm8, %v333_v25, %v336_v1 }
  0x61   :  { %v338_v28 = vsel %vm138_vm11, %v330_v2, %v337_v27 }
  0x62   :  { %v341_v29 = vsel %vm810_vm14, %v338_v28, %v340_v26 }
  0x63   :  { %342 = vst [vmem:[#allocation14] sm:$0xff] %v341_v29 }
  0x64   :  { %419 = dma.vmem_to_hbm [thread:$0]  %s415_s10, 128, %s417_s13, [#allocation13]  }
  0x65   :  { %658 = dma.done.wait [#allocation4], 256  }
  0x66   :  { %659 = vsyncadd [#allocation4], 4294967040 }
  0x67   :  { %660 = dma.done.wait [#allocation7], 512  }
  0x68   :  { %661 = vsyncadd [#allocation7], 4294966784 }
  0x69   :  { %662 = dma.done.wait [#allocation10], 384  }
  0x6a   :  { %663 = vsyncadd [#allocation10], 4294966912 }
  0x6b   :  { %664 = dma.done.wait [#allocation13], 256  }
  0x6c   :  { %665 = vsyncadd [#allocation13], 4294967040 }
  0x6d   :  { %448 = vsyncpa [#allocation3], 1 }
  0x6e   :  { %449 = vsyncpa [#allocation4], 1 }
  0x6f   :  { %450 = vsyncpa [#allocation7], 1 }
  0x70   :  { %451 = vsyncpa [#allocation10], 1 }
  0x71   :  { %452 = vsyncpa [#allocation13], 1 }

</bundles_post_ra>
